<compile_context>
chip_gen: v7x
topology: tpu7x:2x2x1
jax: 0.10.0
libtpu: 0.0.40
codegen_flags: <defaults>
</compile_context>

<pallas_src>
import functools

import jax
import jax.numpy as jnp
from jax.experimental import pallas as pl
from jax.experimental.pallas import tpu as pltpu

_EPS = 1e-5


# ---------------------------------------------------------------------------
# Hardware / tiling helpers
# ---------------------------------------------------------------------------

def _tpu_vmem_caps():
    """(block-footprint cap, vmem_limit_bytes) derived from the chip's VMEM."""
    vmem = 64 << 20  # conservative default (v7x-sized) if query unavailable
    try:
        info = pltpu.get_tpu_info()
        vmem = int(getattr(info, "vmem_capacity_bytes", vmem))
    except Exception:
        pass
    if vmem <= (64 << 20):          # v7x: 64 MiB VMEM per TensorCore
        return 40 << 20, 48 << 20
    return 80 << 20, 96 << 20       # v5e / v6e: 128 MiB VMEM


def _sublane_step(itemsize):
    """Native sublane tile for the dtype (c_tile granularity)."""
    return {1: 32, 2: 16}.get(itemsize, 8)


def _fused_footprint(n, d, hw, itemsize):
    blk = n * d * hw
    # double-buffered in + out blocks, plus f32 compute temporaries + headroom
    return 4 * blk * itemsize + 2 * blk * 4 + (2 << 20)


def _choose_c_tile(n, c, hw, itemsize, footprint_cap):
    """Pick the channel tile for the fused kernel, or None -> two-pass path."""
    step = _sublane_step(itemsize)
    cands = [d for d in range(step, c + 1, step) if c % d == 0]
    if not cands:
        cands = [c]  # tiny / odd channel count: single full-channel block (layout-legal)
    fitting = [d for d in cands if _fused_footprint(n, d, hw, itemsize) <= footprint_cap]
    if not fitting:
        return None
    # Prefer >=4 grid steps (hide DMA prologue/epilogue), then >=2 (v7x megacore),
    # preferring an even number of steps within each group, then the largest tile.
    for min_tiles in (4, 2, 1):
        sub = [d for d in fitting if c // d >= min_tiles]
        if sub:
            even = [d for d in sub if (c // d) % 2 == 0]
            return max(even) if even else max(sub)
    return max(fitting)


def _choose_two_pass_tiles(n, c, hw, itemsize, footprint_cap):
    """(c_tile, hw_tile) for the two-pass path: largest legal block that fits."""
    step = _sublane_step(itemsize)
    c_cands = [d for d in range(step, c + 1, step) if c % d == 0] or [c]
    if hw % 128 == 0:
        hw_cands = [h for h in range(128, hw + 1, 128) if hw % h == 0]
    else:
        hw_cands = [hw]  # lane dim must be full extent if not 128-aligned
    best = None
    for ct in c_cands:
        for ht in hw_cands:
            blk = n * ct * ht
            fp = 4 * blk * itemsize + 2 * blk * 4 + (2 << 20)
            if fp <= footprint_cap:
                if best is None or ct * ht > best[0] * best[1]:
                    best = (ct, ht)
    if best is None:
        # TODO(synk): even the minimal legal tile exceeds the VMEM budget
        # (would additionally need batch tiling); fall back to smallest tile.
        best = (min(c_cands), min(hw_cands))
    return best


# ---------------------------------------------------------------------------
# Fused single-call kernel (one HBM read, one HBM write)
# ---------------------------------------------------------------------------

def _ibn_fused_kernel(x_ref, g_ref, b_ref, o_ref, *, c_tile, c1, n, hw):
    # x block: (N, c_tile, HW); params: (1, c_tile, 1)
    # Moments with f32 accumulation; do not keep the f32 block copy live.
    xf = x_ref[...].astype(jnp.float32)
    s = jnp.sum(xf, axis=-1, keepdims=True)         # (N, ct, 1)
    ss = jnp.sum(xf * xf, axis=-1, keepdims=True)   # (N, ct, 1)
    del xf

    # InstanceNorm stats: per (n, c) over HW.
    inv_hw = jnp.float32(1.0 / hw)
    mu_in = s * inv_hw
    var_in = ss * inv_hw - mu_in * mu_in

    # BatchNorm stats: per channel over (N, HW).
    inv_nhw = jnp.float32(1.0 / (n * hw))
    mu_bn = jnp.sum(s, axis=0, keepdims=True) * inv_nhw            # (1, ct, 1)
    var_bn = jnp.sum(ss, axis=0, keepdims=True) * inv_nhw - mu_bn * mu_bn

    # Per-channel selector: global channel index < c1 -> InstanceNorm, else BN.
    local_c = jax.lax.broadcasted_iota(jnp.int32, (1, c_tile, 1), 1)
    is_in = (pl.program_id(0) * c_tile + local_c) < c1

    mu = jnp.where(is_in, mu_in, mu_bn)                             # (N, ct, 1)
    var = jnp.maximum(jnp.where(is_in, var_in, var_bn), 0.0)

    # Fold the affine into per-(n, c) scale/shift on the tiny stats tensors.
    rstd = jax.lax.rsqrt(var + _EPS)
    scale = g_ref[...] * rstd                                       # (N, ct, 1)
    shift = b_ref[...] - mu * scale                                 # (N, ct, 1)

    # Single FMA-style pass over the big block; re-read x from VMEM (cheap).
    o_ref[...] = (x_ref[...].astype(jnp.float32) * scale + shift).astype(o_ref.dtype)


def _ibn_fused(xf, gamma, beta, c_tile, c1, vmem_limit):
    N, C, HW = xf.shape
    num_tiles = C // c_tile
    kernel = functools.partial(_ibn_fused_kernel, c_tile=c_tile, c1=c1, n=N, hw=HW)
    return pl.pallas_call(
        kernel,
        out_shape=jax.ShapeDtypeStruct((N, C, HW), xf.dtype),
        grid=(num_tiles,),
        in_specs=[
            pl.BlockSpec((N, c_tile, HW), lambda ci: (0, ci, 0)),
            pl.BlockSpec((1, c_tile, 1), lambda ci: (0, ci, 0)),
            pl.BlockSpec((1, c_tile, 1), lambda ci: (0, ci, 0)),
        ],
        out_specs=pl.BlockSpec((N, c_tile, HW), lambda ci: (0, ci, 0)),
        compiler_params=pltpu.CompilerParams(
            dimension_semantics=("parallel",),
            vmem_limit_bytes=int(vmem_limit)),
    )(xf, gamma, beta)


# ---------------------------------------------------------------------------
# Two-pass fallback (stats accumulate, then normalize)
# ---------------------------------------------------------------------------

def _stats_kernel(x_ref, s_ref, ss_ref):
    @pl.when(pl.program_id(1) == 0)
    def _():
        s_ref[...] = jnp.zeros_like(s_ref)
        ss_ref[...] = jnp.zeros_like(ss_ref)
    xf = x_ref[...].astype(jnp.float32)
    s_ref[...] += jnp.sum(xf, axis=-1, keepdims=True)
    ss_ref[...] += jnp.sum(xf * xf, axis=-1, keepdims=True)


def _normalize_kernel(x_ref, scale_ref, shift_ref, o_ref):
    xf = x_ref[...].astype(jnp.float32)
    o_ref[...] = (xf * scale_ref[...] + shift_ref[...]).astype(o_ref.dtype)


def _ibn_two_pass(xf, gamma, beta, c1, itemsize, fp_cap, vmem_limit, tiles=None):
    N, C, HW = xf.shape
    ct, ht = tiles if tiles is not None else _choose_two_pass_tiles(
        N, C, HW, itemsize, fp_cap)

    # Pass 1: per-(n, c) sum / sum-of-squares, accumulated over HW tiles.
    s, ss = pl.pallas_call(
        _stats_kernel,
        out_shape=(jax.ShapeDtypeStruct((N, C, 1), jnp.float32),
                   jax.ShapeDtypeStruct((N, C, 1), jnp.float32)),
        grid=(C // ct, HW // ht),
        in_specs=[pl.BlockSpec((N, ct, ht), lambda ci, hi: (0, ci, hi))],
        out_specs=(pl.BlockSpec((N, ct, 1), lambda ci, hi: (0, ci, 0)),
                   pl.BlockSpec((N, ct, 1), lambda ci, hi: (0, ci, 0))),
        compiler_params=pltpu.CompilerParams(
            dimension_semantics=("parallel", "arbitrary"),
            vmem_limit_bytes=int(vmem_limit)),
    )(xf)
    s = s[..., 0]                                                   # (N, C)
    ss = ss[..., 0]                                                 # (N, C)

    # Tiny per-(n,c)/per-channel math in plain XLA (N*C elements).
    mu_in = s / HW
    var_in = ss / HW - mu_in * mu_in
    mu_bn = jnp.sum(s, axis=0) / (N * HW)
    var_bn = jnp.sum(ss, axis=0) / (N * HW) - mu_bn * mu_bn
    is_in = (jnp.arange(C) < c1)[None, :]
    mu = jnp.where(is_in, mu_in, mu_bn[None, :])
    var = jnp.maximum(jnp.where(is_in, var_in, var_bn[None, :]), 0.0)
    rstd = jax.lax.rsqrt(var + _EPS)
    scale = (gamma[None, :] * rstd).astype(jnp.float32).reshape(N, C, 1)
    shift = (beta[None, :] - mu * gamma[None, :] * rstd).astype(jnp.float32).reshape(N, C, 1)

    # Pass 2: stream-normalize.
    return pl.pallas_call(
        _normalize_kernel,
        out_shape=jax.ShapeDtypeStruct((N, C, HW), xf.dtype),
        grid=(C // ct, HW // ht),
        in_specs=[pl.BlockSpec((N, ct, ht), lambda ci, hi: (0, ci, hi)),
                  pl.BlockSpec((N, ct, 1), lambda ci, hi: (0, ci, 0)),
                  pl.BlockSpec((N, ct, 1), lambda ci, hi: (0, ci, 0))],
        out_specs=pl.BlockSpec((N, ct, ht), lambda ci, hi: (0, ci, hi)),
        compiler_params=pltpu.CompilerParams(
            dimension_semantics=("parallel", "parallel"),
            vmem_limit_bytes=int(vmem_limit)),
    )(xf, scale, shift)


# ---------------------------------------------------------------------------
# Public entry point
# ---------------------------------------------------------------------------

def ibn_forward(x, gamma_in, beta_in, gamma_bn, beta_bn, half):
    """x: (N, C, H, W) NCHW, like the PyTorch module input."""
    N, C, H, W = x.shape
    HW = H * W
    C1 = int(half)

    xf = x.reshape(N, C, HW)  # contiguous -> free view, no extra HBM pass

    # Per-channel affine params for the whole tensor (IN affine ++ BN affine).
    gamma = jnp.concatenate([gamma_in, gamma_bn]).astype(jnp.float32)
    beta = jnp.concatenate([beta_in, beta_bn]).astype(jnp.float32)

    itemsize = x.dtype.itemsize
    fp_cap, vmem_limit = _tpu_vmem_caps()
    c_tile = _choose_c_tile(N, C, HW, itemsize, fp_cap)

    if c_tile is not None:
        out = _ibn_fused(xf, gamma.reshape(1, C, 1), beta.reshape(1, C, 1),
                         c_tile, C1, vmem_limit)
    else:
        out = _ibn_two_pass(xf, gamma, beta, C1, itemsize, fp_cap, vmem_limit)

    return out.reshape(N, C, H, W)


# ---------------------------------------------------------------------------
# Pure-JAX reference and self-test
# ---------------------------------------------------------------------------

def _reference(x, gamma_in, beta_in, gamma_bn, beta_bn, half):
    """Pure-JAX reference mirroring PyTorch IBN.forward (train-mode BN)."""
    x = x.astype(jnp.float32)
    x1, x2 = x[:, :half], x[:, half:]
    mu1 = jnp.mean(x1, axis=(2, 3), keepdims=True)
    var1 = jnp.var(x1, axis=(2, 3), keepdims=True)
    o1 = (x1 - mu1) / jnp.sqrt(var1 + _EPS)
    o1 = o1 * gamma_in[None, :, None, None] + beta_in[None, :, None, None]
    mu2 = jnp.mean(x2, axis=(0, 2, 3), keepdims=True)
    var2 = jnp.var(x2, axis=(0, 2, 3), keepdims=True)
    o2 = (x2 - mu2) / jnp.sqrt(var2 + _EPS)
    o2 = o2 * gamma_bn[None, :, None, None] + beta_bn[None, :, None, None]
    return jnp.concatenate([o1, o2], axis=1)


if __name__ == "__main__":
    key = jax.random.PRNGKey(0)

    # --- Test 1: fused path, small shapes consistent with the module ---------
    N, C, H, W = 2, 4, 16, 16
    half = C // 2
    half2 = C - half
    kx, kgi, kbi, kgb, kbb, k2 = jax.random.split(key, 6)

    x = jax.random.normal(kx, (N, C, H, W), dtype=jnp.float32)
    gamma_in = jax.random.uniform(kgi, (half,), minval=0.5, maxval=1.5)
    beta_in = jax.random.normal(kbi, (half,)) * 0.1
    gamma_bn = jax.random.uniform(kgb, (half2,), minval=0.5, maxval=1.5)
    beta_bn = jax.random.normal(kbb, (half2,)) * 0.1

    out = jax.jit(ibn_forward, static_argnums=(5,))(
        x, gamma_in, beta_in, gamma_bn, beta_bn, half)
    out = jax.block_until_ready(out)
    ref = _reference(x, gamma_in, beta_in, gamma_bn, beta_bn, half)
    assert out.shape == (N, C, H, W)
    assert jnp.allclose(out, ref, atol=1e-4, rtol=1e-4), "fused path mismatch"

    # --- Test 2: two-pass fallback path exercised explicitly -----------------
    N2, C2, H2, W2 = 2, 16, 16, 16
    half_2 = C2 // 2
    ka, kb, kc, kd, ke = jax.random.split(k2, 5)
    x2 = jax.random.normal(ka, (N2, C2, H2, W2), dtype=jnp.float32)
    gi2 = jax.random.uniform(kb, (half_2,), minval=0.5, maxval=1.5)
    bi2 = jax.random.normal(kc, (half_2,)) * 0.1
    gb2 = jax.random.uniform(kd, (C2 - half_2,), minval=0.5, maxval=1.5)
    bb2 = jax.random.normal(ke, (C2 - half_2,)) * 0.1

    fp_cap, vmem_limit = _tpu_vmem_caps()
    out2 = _ibn_two_pass(
        x2.reshape(N2, C2, H2 * W2),
        jnp.concatenate([gi2, gb2]).astype(jnp.float32),
        jnp.concatenate([bi2, bb2]).astype(jnp.float32),
        half_2, x2.dtype.itemsize, fp_cap, vmem_limit,
        tiles=(8, 128),  # force real (c, hw) tiling + stats accumulation
    ).reshape(N2, C2, H2, W2)
    out2 = jax.block_until_ready(out2)
    ref2 = _reference(x2, gi2, bi2, gb2, bb2, half_2)
    assert jnp.allclose(out2, ref2, atol=1e-4, rtol=1e-4), "two-pass path mismatch"

    print("KERNEL_OK")
</pallas_src>

<mosaic_0001>
module attributes {stable_mosaic.version = 11 : i64} {
  func.func @_ibn_fused_kernel(%arg0: i32, %arg1: memref<2x4x256xf32, #tpu.memory_space<vmem>>, %arg2: memref<1x4x1xf32, #tpu.memory_space<vmem>>, %arg3: memref<1x4x1xf32, #tpu.memory_space<vmem>>, %arg4: memref<2x4x256xf32, #tpu.memory_space<vmem>>) attributes {dimension_semantics = [#tpu.dimension_semantics<parallel>], iteration_bounds = array<i64: 1>, scalar_prefetch = 0 : i64, scratch_operands = 0 : i64, tpu.core_type = #tpu.core_type<tc>, window_params = [{transform_indices = @transform_0, window_bounds = array<i64: 2, 4, 256>}, {transform_indices = @transform_1, window_bounds = array<i64: 1, 4, 1>}, {transform_indices = @transform_2, window_bounds = array<i64: 1, 4, 1>}, {transform_indices = @transform_3, window_bounds = array<i64: 2, 4, 256>}]} {
    %c0 = arith.constant 0 : index
    %c0_0 = arith.constant 0 : index
    %c0_1 = arith.constant 0 : index
    %0 = vector.load %arg1[%c0, %c0_0, %c0_1] : memref<2x4x256xf32, #tpu.memory_space<vmem>>, vector<2x4x256xf32>
    %cst = arith.constant dense<0.000000e+00> : vector<2x4xf32>
    %1 = vector.multi_reduction <add>, %0, %cst [2] : vector<2x4x256xf32> to vector<2x4xf32>
    %2 = vector.shape_cast %1 : vector<2x4xf32> to vector<2x4x1xf32>
    %3 = arith.mulf %0, %0 : vector<2x4x256xf32>
    %cst_2 = arith.constant dense<0.000000e+00> : vector<2x4xf32>
    %4 = vector.multi_reduction <add>, %3, %cst_2 [2] : vector<2x4x256xf32> to vector<2x4xf32>
    %5 = vector.shape_cast %4 : vector<2x4xf32> to vector<2x4x1xf32>
    %cst_3 = arith.constant 3.906250e-03 : f32
    %6 = vector.broadcast %cst_3 : f32 to vector<2x4x1xf32>
    %7 = arith.mulf %2, %6 : vector<2x4x1xf32>
    %cst_4 = arith.constant 3.906250e-03 : f32
    %8 = vector.broadcast %cst_4 : f32 to vector<2x4x1xf32>
    %9 = arith.mulf %5, %8 : vector<2x4x1xf32>
    %10 = arith.mulf %7, %7 : vector<2x4x1xf32>
    %11 = arith.subf %9, %10 : vector<2x4x1xf32>
    %cst_5 = arith.constant dense<0.000000e+00> : vector<4x1xf32>
    %12 = vector.multi_reduction <add>, %2, %cst_5 [0] : vector<2x4x1xf32> to vector<4x1xf32>
    %13 = vector.shape_cast %12 : vector<4x1xf32> to vector<1x4x1xf32>
    %cst_6 = arith.constant 0.001953125 : f32
    %14 = vector.broadcast %cst_6 : f32 to vector<1x4x1xf32>
    %15 = arith.mulf %13, %14 : vector<1x4x1xf32>
    %cst_7 = arith.constant dense<0.000000e+00> : vector<4x1xf32>
    %16 = vector.multi_reduction <add>, %5, %cst_7 [0] : vector<2x4x1xf32> to vector<4x1xf32>
    %17 = vector.shape_cast %16 : vector<4x1xf32> to vector<1x4x1xf32>
    %cst_8 = arith.constant 0.001953125 : f32
    %18 = vector.broadcast %cst_8 : f32 to vector<1x4x1xf32>
    %19 = arith.mulf %17, %18 : vector<1x4x1xf32>
    %20 = arith.mulf %15, %15 : vector<1x4x1xf32>
    %21 = arith.subf %19, %20 : vector<1x4x1xf32>
    %22 = tpu.iota {dimensions = array<i32: 1>} : vector<1x4x1xi32>
    %c4_i32 = arith.constant 4 : i32
    %23 = arith.muli %arg0, %c4_i32 : i32
    %24 = vector.broadcast %23 : i32 to vector<1x4x1xi32>
    %25 = arith.addi %24, %22 : vector<1x4x1xi32>
    %c2_i32 = arith.constant 2 : i32
    %26 = vector.broadcast %c2_i32 : i32 to vector<1x4x1xi32>
    %27 = arith.cmpi slt, %25, %26 : vector<1x4x1xi32>
    %28 = vector.shape_cast %27 : vector<1x4x1xi1> to vector<1x4x1xi1>
    %29 = vector.broadcast %28 : vector<1x4x1xi1> to vector<2x4x1xi1>
    %30 = vector.shape_cast %15 : vector<1x4x1xf32> to vector<1x4x1xf32>
    %31 = vector.broadcast %30 : vector<1x4x1xf32> to vector<2x4x1xf32>
    %32 = arith.select %29, %7, %31 : vector<2x4x1xi1>, vector<2x4x1xf32>
    %33 = vector.shape_cast %27 : vector<1x4x1xi1> to vector<1x4x1xi1>
    %34 = vector.broadcast %33 : vector<1x4x1xi1> to vector<2x4x1xi1>
    %35 = vector.shape_cast %21 : vector<1x4x1xf32> to vector<1x4x1xf32>
    %36 = vector.broadcast %35 : vector<1x4x1xf32> to vector<2x4x1xf32>
    %37 = arith.select %34, %11, %36 : vector<2x4x1xi1>, vector<2x4x1xf32>
    %cst_9 = arith.constant 0.000000e+00 : f32
    %38 = vector.broadcast %cst_9 : f32 to vector<2x4x1xf32>
    %39 = arith.maximumf %37, %38 : vector<2x4x1xf32>
    %cst_10 = arith.constant 9.99999974E-6 : f32
    %40 = vector.broadcast %cst_10 : f32 to vector<2x4x1xf32>
    %41 = arith.addf %39, %40 : vector<2x4x1xf32>
    %42 = math.rsqrt %41 : vector<2x4x1xf32>
    %c0_11 = arith.constant 0 : index
    %c0_12 = arith.constant 0 : index
    %c0_13 = arith.constant 0 : index
    %43 = vector.load %arg2[%c0_11, %c0_12, %c0_13] : memref<1x4x1xf32, #tpu.memory_space<vmem>>, vector<1x4x1xf32>
    %44 = vector.broadcast %43 : vector<1x4x1xf32> to vector<2x4x1xf32>
    %45 = arith.mulf %44, %42 : vector<2x4x1xf32>
    %c0_14 = arith.constant 0 : index
    %c0_15 = arith.constant 0 : index
    %c0_16 = arith.constant 0 : index
    %46 = vector.load %arg3[%c0_14, %c0_15, %c0_16] : memref<1x4x1xf32, #tpu.memory_space<vmem>>, vector<1x4x1xf32>
    %47 = arith.mulf %32, %45 : vector<2x4x1xf32>
    %48 = vector.broadcast %46 : vector<1x4x1xf32> to vector<2x4x1xf32>
    %49 = arith.subf %48, %47 : vector<2x4x1xf32>
    %c0_17 = arith.constant 0 : index
    %c0_18 = arith.constant 0 : index
    %c0_19 = arith.constant 0 : index
    %50 = vector.load %arg1[%c0_17, %c0_18, %c0_19] : memref<2x4x256xf32, #tpu.memory_space<vmem>>, vector<2x4x256xf32>
    %51 = vector.broadcast %45 : vector<2x4x1xf32> to vector<2x4x256xf32>
    %52 = arith.mulf %50, %51 : vector<2x4x256xf32>
    %53 = vector.broadcast %49 : vector<2x4x1xf32> to vector<2x4x256xf32>
    %54 = arith.addf %52, %53 : vector<2x4x256xf32>
    %c0_20 = arith.constant 0 : index
    %c0_21 = arith.constant 0 : index
    %c0_22 = arith.constant 0 : index
    %55 = vector.load %arg4[%c0_20, %c0_21, %c0_22] : memref<2x4x256xf32, #tpu.memory_space<vmem>>, vector<2x4x256xf32>
    tpu.vector_store %arg4[%c0_20, %c0_21, %c0_22], %54 {strides = array<i32>} : memref<2x4x256xf32, #tpu.memory_space<vmem>>, vector<2x4x256xf32>,
    return
  }
  func.func @transform_0(%arg0: i32) -> (i32, i32, i32) {
    %c0_i32 = arith.constant 0 : i32
    %c0_i32_0 = arith.constant 0 : i32
    %c0_i32_1 = arith.constant 0 : i32
    return %c0_i32, %arg0, %c0_i32_0 : i32, i32, i32
  }
  func.func @transform_1(%arg0: i32) -> (i32, i32, i32) {
    %c0_i32 = arith.constant 0 : i32
    %c0_i32_0 = arith.constant 0 : i32
    %c0_i32_1 = arith.constant 0 : i32
    return %c0_i32, %arg0, %c0_i32_0 : i32, i32, i32
  }
  func.func @transform_2(%arg0: i32) -> (i32, i32, i32) {
    %c0_i32 = arith.constant 0 : i32
    %c0_i32_0 = arith.constant 0 : i32
    %c0_i32_1 = arith.constant 0 : i32
    return %c0_i32, %arg0, %c0_i32_0 : i32, i32, i32
  }
  func.func @transform_3(%arg0: i32) -> (i32, i32, i32) {
    %c0_i32 = arith.constant 0 : i32
    %c0_i32_0 = arith.constant 0 : i32
    %c0_i32_1 = arith.constant 0 : i32
    return %c0_i32, %arg0, %c0_i32_0 : i32, i32, i32
  }
}

</mosaic_0001>

<bundles_post_ra>
// kernel: ibn_forward.1
= control target key start
LH: loop header
LB: loop body
LE: loop exit
PB: predicated region body
PF: predicated region fallthrough
CT: control target
= control target key end

     0   :  { %vm22_vm0 = vcmask 1043456   ;;  %v163_v20 = vmov 0   ;;  %v69_v26 = vlaneseq  ;;  %v164_v63 = vmov 839922192   ;;  %s235_s0 = inlined_call_operand.vmem [shape: f32[2,4,256], index: 0, kind: input, shape index: {}]   ;;  %s236_s1 = inlined_call_operand.vmem [shape: f32[1,4,1], index: 1, kind: input, shape index: {}]   ;;  %s237_s2 = inlined_call_operand.vmem [shape: f32[1,4,1], index: 2, kind: input, shape index: {}]   ;;  %s238_s3 = inlined_call_operand.vmem [shape: f32[2,4,256], index: 3, kind: output, shape index: {}]  }
   0x1   :  { %v188_v0 = vld [vmem:[%s235_s0] sm:$0xff]  ;;  %v193_v1 = vld [vmem:[%s235_s0 + $0x8] sm:$0xff]  ;;  %156 = vset.pattern.permute.xlu1 %v163_v20  ;;  %155 = vset.pattern.permute.xlu0 %v163_v20 }
   0x2   :  { %v18_v2 = vcombine.high %v188_v0, %v188_v0  ;;  %v23_v3 = vsel %vm22_vm0, %v188_v0, 0.0  ;;  %v33_v4 = vmul.f32 %v188_v0, %v188_v0  ;;  %v19_v5 = vcombine.high %v193_v1, %v193_v1  ;;  %v87_v51 = vld [vmem:[%s236_s1] sm:$0xf] }
   0x3   :  { %v28_v6 = vsel %vm22_vm0, %v193_v1, 0.0  ;;  %v34_v7 = vmul.f32 %v193_v1, %v193_v1  ;;  %v70_v39 = vshrl.u32 %v69_v26, 7  ;;  %v90_v57 = vld [vmem:[%s237_s2] sm:$0xf] }
   0x4   :  { %v24_v8 = vsel %vm22_vm0, %v18_v2, 0.0  ;;  %v37_v9 = vcombine.high %v33_v4, %v33_v4  ;;  %v41_v10 = vsel %vm22_vm0, %v33_v4, 0.0  ;;  %v29_v11 = vsel %vm22_vm0, %v19_v5, 0.0 }
   0x5   :  { %v25_v12 = vadd.f32 %v24_v8, %v23_v3  ;;  %v38_v13 = vcombine.high %v34_v7, %v34_v7  ;;  %v46_v15 = vsel %vm22_vm0, %v34_v7, 0.0  ;;  %v30_v17 = vadd.f32 %v29_v11, %v28_v6 }
   0x6   :  { %v42_v14 = vsel %vm22_vm0, %v37_v9, 0.0  ;;  %vm74_vm1 = vcmp.lt.s32.totalorder %v70_v39, 2  ;;  %v104_v2 = vunpack.c.l.s4 %v164_v63 }
   0x7   :  { %26 = vadd.xlane.f32.xlu0 %v25_v12  ;;  %v43_v16 = vadd.f32 %v42_v14, %v41_v10  ;;  %v47_v18 = vsel %vm22_vm0, %v38_v13, 0.0 }
   0x8   :  { %v48_v19 = vadd.f32 %v47_v18, %v46_v15  ;;  %v105_v3 = vunpack.c.0.s8 %v104_v2 }
   0x9   :  { %44 = vadd.xlane.f32.xlu1 %v43_v16 }
   0xa   :  { %v108_v4 = vsub.s32 %v105_v3, %v70_v39 }
   0xb   :  { %31 = vadd.xlane.f32.xlu0 %v30_v17 }
   0xd   :  { %49 = vadd.xlane.f32.xlu1 %v48_v19 }
  0x94   :  { %v27_v21 = vpop.xlane.xlu0 %26 }
  0x95   :  { %v51_v23 = vmul.f32 0.00390625, %v27_v21  ;;  %v59_v25 = vsel %vm22_vm0, %v27_v21, 0.0 }
  0x96   :  { %v45_v22 = vpop.xlane.xlu1 %44 }
  0x97   :  { %v55_v31 = vmul.f32 %v51_v23, %v51_v23  ;;  %v53_v32 = vmul.f32 0.00390625, %v45_v22  ;;  %v63_v33 = vsel %vm22_vm0, %v45_v22, 0.0 }
  0x98   :  { %v32_v24 = vpop.xlane.xlu0 %31 }
  0x99   :  { %v52_v27 = vmul.f32 0.00390625, %v32_v24  ;;  %v60_v28 = vsel %vm22_vm0, %v32_v24, 0.0  ;;  %v57_v42 = vsub.f32 %v53_v32, %v55_v31 }
  0x9a   :  { %v61_v29 = vadd.f32 %v60_v28, %v59_v25  ;;  %v50_v30 = vpop.xlane.xlu1 %49 }
  0x9b   :  { %v64_v34 = vsel %vm22_vm0, %v50_v30, 0.0  ;;  %v56_v35 = vmul.f32 %v52_v27, %v52_v27  ;;  %v54_v37 = vmul.f32 0.00390625, %v50_v30 }
  0x9c   :  { %v62_v36 = vmul.f32 0.001953125, %v61_v29  ;;  %v65_v38 = vadd.f32 %v64_v34, %v63_v33 }
  0x9d   :  { %v58_v43 = vsub.f32 %v54_v37, %v56_v35 }
  0x9e   :  { %v66_v40 = vmul.f32 0.001953125, %v65_v38  ;;  %v67_v41 = vmul.f32 %v62_v36, %v62_v36  ;;  %v77_v56 = vsel %vm74_vm1, %v51_v23, %v62_v36  ;;  %v78_v59 = vsel %vm74_vm1, %v52_v27, %v62_v36 }
  0xa0   :  { %v68_v44 = vsub.f32 %v66_v40, %v67_v41 }
  0xa2   :  { %v79_v45 = vsel %vm74_vm1, %v57_v42, %v68_v44  ;;  %v80_v46 = vsel %vm74_vm1, %v58_v43, %v68_v44 }
  0xa3   :  { %v81_v47 = vmax.f32 %v79_v45, 0.0  ;;  %v82_v48 = vmax.f32 %v80_v46, 0.0 }
  0xa5   :  { %v83_v49 = vadd.f32 1e-05, %v81_v47  ;;  %v84_v50 = vadd.f32 1e-05, %v82_v48 }
  0xa7   :  { %159 = vrsqrt.f32 %v83_v49 }
  0xa8   :  { %161 = vrsqrt.f32 %v84_v50 }
  0xb1   :  { %v160_v52 = vpop.eup %159 }
  0xb2   :  { %v162_v53 = vpop.eup %161  ;;  %v88_v54 = vmul.f32 %v160_v52, %v87_v51 }
  0xb3   :  { %v89_v55 = vmul.f32 %v162_v53, %v87_v51 }
  0xb4   :  { %97 = vperm.xlu0 %155, %v88_v54   ;;  %v91_v58 = vmul.f32 %v88_v54, %v77_v56 }
  0xb5   :  { %101 = vperm.xlu1 %156, %v89_v55   ;;  %v92_v61 = vmul.f32 %v89_v55, %v78_v59 }
  0xb6   :  { %v93_v60 = vsub.f32 %v90_v57, %v91_v58 }
  0xb7   :  { %v94_v62 = vsub.f32 %v90_v57, %v92_v61 }
  0xb9   :  { %123 = vperm.xlu1 %156, %v93_v60  }
  0xbd   :  { %127 = vperm.xlu1 %156, %v94_v62  }
 0x133   :  { %v98_v5 = vpop.permute.xlu0 %97 }
 0x134   :  { %v102_v6 = vpop.permute.xlu1 %101  ;;  %v109_v7 = vrot.slane %v98_v5, %v108_v4 }
 0x135   :  { %v116_v9 = vrot.slane %v102_v6, %v108_v4 }
 0x136   :  { %v119_v10 = vmul.f32 %v109_v7, %v188_v0 }
 0x137   :  { %v120_v14 = vmul.f32 %v116_v9, %v193_v1 }
 0x138   :  { %v124_v8 = vpop.permute.xlu1 %123 }
 0x139   :  { %v135_v11 = vrot.slane %v124_v8, %v108_v4 }
 0x13b   :  { %v145_v12 = vadd.f32 %v135_v11, %v119_v10 }
 0x13c   :  { %v128_v13 = vpop.permute.xlu1 %127 }
 0x13d   :  { %147 = vst [vmem:[%s238_s3] sm:$0xff] %v145_v12  ;;  %v142_v15 = vrot.slane %v128_v13, %v108_v4 }
 0x13f   :  { %v146_v16 = vadd.f32 %v142_v15, %v120_v14 }
 0x141   :  { %148 = vst [vmem:[%s238_s3 + $0x8] sm:$0xff] %v146_v16 }

</bundles_post_ra>
